<compile_context>
chip_gen: v6e
topology: v6e:2x2x1
jax: 0.10.0
libtpu: 0.0.40
codegen_flags: <defaults>
</compile_context>

<pallas_src>
import functools

import jax
import jax.numpy as jnp
from jax.experimental import pallas as pl
from jax.experimental.pallas import tpu as pltpu


def _rce_tile_kernel(logits_ref, teacher_ref, loss_ref, *, eps: float):
    """Blocks: logits/teacher (1, C, TR, 128); loss (1, TR, 128)."""
    x = logits_ref[...].astype(jnp.float32)          # (1, C, TR, 128)
    t = teacher_ref[...].astype(jnp.float32)         # (1, C, TR, 128)

    # Numerically stable softmax numerator over channels (axis=1).  With the
    # spatial-minor layout these reductions are elementwise VPU ops across the
    # C major slices (no cross-sublane XLU work).
    m = jnp.max(x, axis=1, keepdims=True)             # (1, 1, TR, 128)
    e = jnp.exp(x - m)                                # (1, C, TR, 128)
    denom = jnp.sum(e, axis=1)                        # (1, TR, 128)

    # torch.clamp(teacher, eps, 1.0) — keep the upper bound to match the spec.
    log_t = jnp.log(jnp.clip(t, eps, 1.0))            # (1, C, TR, 128)
    num = jnp.sum(e * log_t, axis=1)                  # (1, TR, 128)

    # sum_c softmax(x)_c * log t_c == num / denom  (single per-pixel divide).
    loss_ref[...] = -(num / denom)


def _vmem_capacity_bytes() -> int:
    """Per-TensorCore VMEM capacity; conservative v7x fallback (64 MiB)."""
    try:
        info = pltpu.get_tpu_info()
        cap = int(getattr(info, "vmem_capacity_bytes", 0))
        if cap > 0:
            return cap
    except Exception:
        pass
    return 64 * 1024 * 1024


def reverse_cross_entropy_loss(student_logits, teacher_soft_targets, eps=1e-8):
    """NCHW inputs -> scalar f32 loss matching the PyTorch module:
        -mean_{n,h,w}( sum_c softmax(logits, dim=1)_c * log(clamp(teacher_c, eps, 1)) )
    """
    assert student_logits.shape == teacher_soft_targets.shape
    N, C, H, W = student_logits.shape
    S = H * W

    LANE = 128
    SUB = 8

    # --- spatial-minor layout: (N, C, rows, 128) ----------------------------
    # Pad spatial only to the next multiple of 128 (tiny; at most 127 elems per
    # (n, c) row), NOT to a tile multiple.
    s_pad = -(-S // LANE) * LANE
    rows = s_pad // LANE

    logits = student_logits.reshape(N, C, S)
    teacher = teacher_soft_targets.reshape(N, C, S)
    if s_pad > S:
        pad = ((0, 0), (0, 0), (0, s_pad - S))
        # Padded lanes yield finite garbage loss values that are sliced off below.
        logits = jnp.pad(logits, pad)
        teacher = jnp.pad(teacher, pad)
    logits = logits.reshape(N, C, rows, LANE)
    teacher = teacher.reshape(N, C, rows, LANE)

    itemsize = max(
        jnp.dtype(student_logits.dtype).itemsize,
        jnp.dtype(teacher_soft_targets.dtype).itemsize,
    )

    # --- generation-aware VMEM budget ---------------------------------------
    vmem_cap = _vmem_capacity_bytes()            # 64 MiB (v7x) / 128 MiB (v5e, v6e)
    vmem_budget = vmem_cap // 3                  # ~21 MiB on v7x, ~42 MiB on v5e/v6e
    vmem_limit = min(96 * 1024 * 1024, (3 * vmem_cap) // 4)

    # VMEM bytes per row of 128 pixels:
    #   2 inputs x 2 pipeline buffers x C x 128 x itemsize   (pipelined inputs)
    # + ~4 f32 (C, 128) in-kernel temporaries (x, e, log_t, e*log_t)
    # + double-buffered f32 output row.
    bytes_per_row = C * LANE * (4 * itemsize + 4 * 4) + 2 * LANE * 4
    tr = max(1, vmem_budget // bytes_per_row)    # as many rows per step as VMEM allows
    tr = min(tr, rows)
    # v7x has 2 TensorCores: keep at least 2 grid steps when the data allows it.
    if N * (-(-rows // tr)) < 2 and rows > 1:
        tr = -(-rows // 2)
    # Block-shape rule: second-minor block dim must be a multiple of 8 or equal
    # the full array dim.
    if tr < rows:
        tr = max(SUB, (tr // SUB) * SUB)
        tr = min(tr, rows)

    num_tiles = -(-rows // tr)   # ragged last tile -> Pallas partial-block masking
    kernel = functools.partial(_rce_tile_kernel, eps=float(eps))

    loss_map = pl.pallas_call(
        kernel,
        out_shape=jax.ShapeDtypeStruct((N, rows, LANE), jnp.float32),
        grid_spec=pltpu.PrefetchScalarGridSpec(
            num_scalar_prefetch=0,
            grid=(N, num_tiles),
            in_specs=[
                pl.BlockSpec((1, C, tr, LANE), lambda n, s: (n, 0, s, 0)),
                pl.BlockSpec((1, C, tr, LANE), lambda n, s: (n, 0, s, 0)),
            ],
            out_specs=pl.BlockSpec((1, tr, LANE), lambda n, s: (n, s, 0)),
        ),
        compiler_params=pltpu.CompilerParams(
            # No cross-step accumulator -> both grid axes fully parallel
            # (lets v7x shard (n, row-tile) steps across its 2 TensorCores).
            dimension_semantics=("parallel", "parallel"),
            vmem_limit_bytes=int(vmem_limit),
        ),
    )(logits, teacher)

    # Drop spatial padding, then take the mean in f32 in the wrapper.
    loss_map = loss_map.reshape(N, s_pad)[:, :S]
    return jnp.mean(loss_map)


def _reference(student_logits, teacher_soft_targets, eps=1e-8):
    probs = jax.nn.softmax(student_logits.astype(jnp.float32), axis=1)
    t = jnp.clip(teacher_soft_targets.astype(jnp.float32), eps, 1.0)
    return -jnp.mean(jnp.sum(probs * jnp.log(t), axis=1))


if __name__ == "__main__":
    key = jax.random.PRNGKey(0)
    k1, k2 = jax.random.split(key)

    N, C, H, W = 2, 4, 16, 16
    student_logits = jax.random.normal(k1, (N, C, H, W), dtype=jnp.float32)
    # Teacher soft targets: a valid probability distribution over channels.
    teacher_logits = jax.random.normal(k2, (N, C, H, W), dtype=jnp.float32)
    teacher_soft_targets = jax.nn.softmax(teacher_logits, axis=1)

    loss = reverse_cross_entropy_loss(student_logits, teacher_soft_targets)
    loss = jax.block_until_ready(loss)

    ref = _reference(student_logits, teacher_soft_targets)
    assert jnp.allclose(loss, ref, rtol=1e-5, atol=1e-5), (loss, ref)

    print("KERNEL_OK")
</pallas_src>

<mosaic_0001>
module attributes {stable_mosaic.version = 11 : i64} {
  func.func @_rce_tile_kernel(%arg0: i32, %arg1: i32, %arg2: memref<1x4x2x128xf32, #tpu.memory_space<vmem>>, %arg3: memref<1x4x2x128xf32, #tpu.memory_space<vmem>>, %arg4: memref<1x2x128xf32, #tpu.memory_space<vmem>>) attributes {dimension_semantics = [#tpu.dimension_semantics<parallel>, #tpu.dimension_semantics<parallel>], iteration_bounds = array<i64: 2, 1>, scalar_prefetch = 0 : i64, scratch_operands = 0 : i64, tpu.core_type = #tpu.core_type<tc>, window_params = [{transform_indices = @transform_0, window_bounds = array<i64: 1, 4, 2, 128>}, {transform_indices = @transform_1, window_bounds = array<i64: 1, 4, 2, 128>}, {transform_indices = @transform_2, window_bounds = array<i64: 1, 2, 128>}]} {
    %c0 = arith.constant 0 : index
    %c0_0 = arith.constant 0 : index
    %c0_1 = arith.constant 0 : index
    %c0_2 = arith.constant 0 : index
    %0 = vector.load %arg2[%c0, %c0_0, %c0_1, %c0_2] : memref<1x4x2x128xf32, #tpu.memory_space<vmem>>, vector<1x4x2x128xf32>
    %c0_3 = arith.constant 0 : index
    %c0_4 = arith.constant 0 : index
    %c0_5 = arith.constant 0 : index
    %c0_6 = arith.constant 0 : index
    %1 = vector.load %arg3[%c0_3, %c0_4, %c0_5, %c0_6] : memref<1x4x2x128xf32, #tpu.memory_space<vmem>>, vector<1x4x2x128xf32>
    %cst = arith.constant dense<0xFF800000> : vector<1x2x128xf32>
    %2 = vector.multi_reduction <maximumf>, %0, %cst [1] : vector<1x4x2x128xf32> to vector<1x2x128xf32>
    %3 = vector.shape_cast %2 : vector<1x2x128xf32> to vector<1x1x2x128xf32>
    %4 = vector.broadcast %3 : vector<1x1x2x128xf32> to vector<1x4x2x128xf32>
    %5 = arith.subf %0, %4 : vector<1x4x2x128xf32>
    %6 = math.exp %5 : vector<1x4x2x128xf32>
    %cst_7 = arith.constant dense<0.000000e+00> : vector<1x2x128xf32>
    %7 = vector.multi_reduction <add>, %6, %cst_7 [1] : vector<1x4x2x128xf32> to vector<1x2x128xf32>
    %cst_8 = arith.constant 9.99999993E-9 : f32
    %cst_9 = arith.constant 1.000000e+00 : f32
    %8 = vector.broadcast %cst_8 : f32 to vector<1x4x2x128xf32>
    %9 = arith.maximumf %8, %1 : vector<1x4x2x128xf32>
    %10 = vector.broadcast %cst_9 : f32 to vector<1x4x2x128xf32>
    %11 = arith.minimumf %10, %9 : vector<1x4x2x128xf32>
    %12 = math.log %11 : vector<1x4x2x128xf32>
    %13 = arith.mulf %6, %12 : vector<1x4x2x128xf32>
    %cst_10 = arith.constant dense<0.000000e+00> : vector<1x2x128xf32>
    %14 = vector.multi_reduction <add>, %13, %cst_10 [1] : vector<1x4x2x128xf32> to vector<1x2x128xf32>
    %15 = arith.divf %14, %7 : vector<1x2x128xf32>
    %cst_11 = arith.constant 0.000000e+00 : f32
    %16 = vector.broadcast %cst_11 : f32 to vector<1x2x128xf32>
    %17 = arith.subf %16, %15 : vector<1x2x128xf32>
    %c0_12 = arith.constant 0 : index
    %c0_13 = arith.constant 0 : index
    %c0_14 = arith.constant 0 : index
    %18 = vector.load %arg4[%c0_12, %c0_13, %c0_14] : memref<1x2x128xf32, #tpu.memory_space<vmem>>, vector<1x2x128xf32>
    tpu.vector_store %arg4[%c0_12, %c0_13, %c0_14], %17 {strides = array<i32>} : memref<1x2x128xf32, #tpu.memory_space<vmem>>, vector<1x2x128xf32>,
    return
  }
  func.func @transform_0(%arg0: i32, %arg1: i32) -> (i32, i32, i32, i32) {
    %c0_i32 = arith.constant 0 : i32
    %c0_i32_0 = arith.constant 0 : i32
    %c0_i32_1 = arith.constant 0 : i32
    return %arg0, %c0_i32, %arg1, %c0_i32_0 : i32, i32, i32, i32
  }
  func.func @transform_1(%arg0: i32, %arg1: i32) -> (i32, i32, i32, i32) {
    %c0_i32 = arith.constant 0 : i32
    %c0_i32_0 = arith.constant 0 : i32
    %c0_i32_1 = arith.constant 0 : i32
    return %arg0, %c0_i32, %arg1, %c0_i32_0 : i32, i32, i32, i32
  }
  func.func @transform_2(%arg0: i32, %arg1: i32) -> (i32, i32, i32) {
    %c0_i32 = arith.constant 0 : i32
    %c0_i32_0 = arith.constant 0 : i32
    return %arg0, %arg1, %c0_i32 : i32, i32, i32
  }
}

</mosaic_0001>

<bundles_post_ra>
// kernel: tpu_custom_call.1
= control target key start
LH: loop header
LB: loop body
LE: loop exit
PB: predicated region body
PF: predicated region fallthrough
CT: control target
= control target key end

     0   :  { %7 = vsyncpa [#allocation3], 0  ;;  %s858_s0 = inlined_call_operand.hbm [shape: f32[2,4,2,128], index: 0, kind: input, shape index: {}]   ;;  %s859_s1 = inlined_call_operand.hbm [shape: f32[2,4,2,128], index: 1, kind: input, shape index: {}]   ;;  %s860_s2 = inlined_call_operand.hbm [shape: f32[2,2,128], index: 2, kind: output, shape index: {}]  }
   0x1   :  { %9 = vsyncpa [#allocation3 + $0x1], 0 }
   0x2   :  { %10 = vsyncpa [#allocation6], 0 }
   0x3   :  { %12 = vsyncpa [#allocation6 + $0x1], 0 }
   0x4   :  { %13 = vsyncpa [#allocation4], 0 }
   0x5   :  { %15 = vsyncpa [#allocation4 + $0x1], 0  ;;  %s678_s9 = smov 0   ;;  %s680_s10 = smov 0  }
   0x6   :  { %s682_s11 = smov 0   ;;  %s684_s12 = smov 0  }
   0x7   :  { %s686_s13 = smov 0   ;;  %s688_s14 = smov 0  }
   0x8 LB: > { %s409_s15 = sadd.s32 4294967295, %s656_s14   ;;  %s410_s16 = sadd.s32 4294967294, %s656_s14   ;;  %s656_s14 = sphi %s688_s14, %s21_s14   ;;  %s652_s13 = sphi %s686_s13, %s872_s13   ;;  %s648_s12 = sphi %s684_s12, %s871_s12   ;;  %s644_s11 = sphi %s682_s11, %s870_s11   ;;  %s640_s10 = sphi %s680_s10, %s869_s10   ;;  %s636_s9 = sphi %s678_s9, %s868_s9  }
   0x9   : > { %s33_s17 = sadd.s32 1, %s652_s13  ;;  %s42_s18 = sadd.s32 1, %s644_s11 }
   0xa   : > { %p35_p0 = scmp.ge.s32.totalorder %s33_s17, 2  ;;  %p49_p1 = scmp.ne.s32.totalorder %s644_s11, %s640_s10 }
   0xb   : > { %p50_p2 = scmp.eq.s32.totalorder %s656_s14, 0  ;;  %p55_p3 = scmp.ne.s32.totalorder %s640_s10, %s636_s9 }
   0xc   : > { %s874_s17 = smov (%p35_p0, %s33_s17), 0  ;;  %p56_p5 = scmp.eq.s32.totalorder %s409_s15, 0 }
   0xd   : > { %p719_p4 = por %p50_p2, %p49_p1  ;;  %s37_s20 = ssub.s32 %s652_s13, %s874_s17 }
   0xe   : > { %p109_p6 = scmp.eq.s32.totalorder %s409_s15, 1  ;;  %p40_p7 = scmp.eq.s32.totalorder %s37_s20, 0 }
   0xf   : > { %p725_p8 = por %p56_p5, %p55_p3  ;;  %p115_p10 = scmp.eq.s32.totalorder %s410_s16, 1 }
  0x10   : > { %p729_p9 = por %p109_p6, %p49_p1  ;;  %p446_p13 = scmp.lt.s32.totalorder %s656_s14, 2 }
  0x11   : > { %s734_s23 = scalar_select %p40_p7, %s644_s11, %s42_s18  }
  0x12   : > { %p736_p11 = por %p115_p10, %p55_p3  ;;  %s743_s25 = sand.u32 1, %s644_s11  }
  0x13   : > { %s413_s26 = sshll.u32 %s743_s25, 3  ;;  %s427_s27 = sshll.u32 %s652_s13, 7 }
  0x14   : > { %s146_s30 = scalar_lea.hbm %s858_s0, %s427_s27  ;;  %s139_s3 = scalar_lea.vmem [#allocation2], %s413_s26 }
  0x15   : > { %s147_s4 = sshll.u32 %s139_s3, 4  ;;  %p756_p0 = pnand %p446_p13, %p719_p4  ;;  %s148_s4 = int_to_ptr.vmem [resolvable:$true] %s147_s4 }
  0x16   : > { %p419_p1 = scmp.ge.s32.totalorder %s656_s14, 1  ;;  %s136_s6 = scalar_lea.sflag [#allocation3], %s743_s25 }
  0x17   : > { %p518_p2 = pneg %p756_p0  ;;  %s529_s7 = scalar_lea.vmem %s148_s4, 128 }
  0x18   : > { %p530_p3 = scmp.ne.s32.totalorder %s148_s4, %s529_s7  ;;  %s658_s8 = smov [#allocation2]  }
  0x19   : > { %s534_s15 = sshll.u32 %s658_s8, 4  ;;  %s535_s15 = int_to_ptr.vmem [resolvable:$false] %s534_s15 }
  0x1a   : > { %p532_p5 = pnand %p530_p3, %p518_p2  ;;  %s536_s16 = scalar_lea.vmem %s535_s15, 256 }
  0x1b   : > { %p537_p4 = scmp.lt.s32.totalorder %s148_s4, %s535_s15  ;;  %p538_p7 = scmp.lt.s32.totalorder %s536_s16, %s529_s7 }
  0x1c   : > { %p533_p6 = pneg %p532_p5 }
  0x1d   : > { %p539_p10 = por %p538_p7, %p537_p4 }
  0x1f   : > { %p540_p13 = pnand %p539_p10, %p533_p6 }
  0x21   : > { %543 = shalt.err (!%p540_p13)
}
  0x22   : > { %s659_s18 = smov 32   ;;  %s660_s19 = smov 2  }
  0x23   : > { %438 = dma.hbm_to_vmem [thread:$0]  (!%p756_p0), %s146_s30, 128, %s148_s4, %s136_s6, %s659_s18, %s659_s18, %s660_s19  }
  0x24   : > { %p177_p3 = scmp.lt.s32.totalorder %s656_s14, 3  ;;  %s168_s29 = scalar_lea.hbm %s859_s1, %s427_s27 }
  0x25   : > { %s161_s7 = scalar_lea.vmem [#allocation5], %s413_s26  ;;  %s158_s15 = scalar_lea.sflag [#allocation6], %s743_s25 }
  0x26   : > { %p777_p5 = pnand %p419_p1, %p177_p3  ;;  %s169_s8 = sshll.u32 %s161_s7, 4  ;;  %s170_s8 = int_to_ptr.vmem [resolvable:$true] %s169_s8 }
  0x27   : > { %s557_s16 = scalar_lea.vmem %s170_s8, 128  ;;  %s661_s30 = smov [#allocation5]  }
  0x28   : > { %p558_p6 = scmp.ne.s32.totalorder %s170_s8, %s557_s16  ;;  %s562_s4 = sshll.u32 %s661_s30, 4  ;;  %s563_s4 = int_to_ptr.vmem [resolvable:$false] %s562_s4 }
  0x29   : > { %s564_s27 = scalar_lea.vmem %s563_s4, 256  ;;  %p565_p10 = scmp.lt.s32.totalorder %s170_s8, %s563_s4 }
  0x2a   : > { %p560_p4 = pnand %p558_p6, %p518_p2  ;;  %p566_p1 = scmp.lt.s32.totalorder %s564_s27, %s557_s16 }
  0x2c   : > { %p561_p7 = pneg %p560_p4  ;;  %p567_p13 = por %p566_p1, %p565_p10 }
  0x2e   : > { %p568_p3 = pnand %p567_p13, %p561_p7 }
  0x30   : > { %571 = shalt.err (!%p568_p3)
}
  0x31   : > { %441 = dma.hbm_to_vmem [thread:$0]  (!%p756_p0), %s168_s29, 128, %s170_s8, %s158_s15, %s659_s18, %s659_s18, %s660_s19  }
  0x32   : > { %181 = sbr.rel (%p777_p5) target bundleno = 123 (0x7b), region = 28  ;;  %s792_s25 = sand.u32 (!%p777_p5), 1, %s640_s10  }
  0x33   : > { %s420_s26 = sshll.u32 (!%p777_p5), %s792_s25, 3  ;;  %s184_s6 = scalar_lea.sflag (!%p777_p5), [#allocation3], %s792_s25 }
  0x34   : > { %s187_s20 = scalar_lea.vmem (!%p777_p5), [#allocation2], %s420_s26 }
  0x37   : > { %623 = dma.done.wait (%p725_p8), %s184_s6, 128  }
  0x38   : > { %625 = vsyncadd (%p725_p8), %s184_s6, 4294967168  ;;  %s193_s5 = scalar_lea.sflag [#allocation6], %s792_s25  ;;  %s196_s18 = scalar_lea.vmem [#allocation5], %s420_s26 }
  0x39   : > { %627 = dma.done.wait (%p725_p8), %s193_s5, 128  }
  0x3a   : > { %629 = vsyncadd (%p725_p8), %s193_s5, 4294967168  ;;  %vm230_vm0 = vcmask 1041408   ;;  %v222_v0 = vld [vmem:[%s187_s20] sm:$0x3]  ;;  %v223_v1 = vld [vmem:[%s187_s20 + $0x2] sm:$0x3] }
  0x3b   : > { %v224_v2 = vld [vmem:[%s187_s20 + $0x4] sm:$0x3]  ;;  %v225_v3 = vld [vmem:[%s187_s20 + $0x6] sm:$0x3]  ;;  %v226_v4 = vld [vmem:[%s196_s18] sm:$0x3] }
  0x3c   : > { %v227_v5 = vld [vmem:[%s196_s18 + $0x2] sm:$0x3]  ;;  %v228_v6 = vld [vmem:[%s196_s18 + $0x4] sm:$0x3]  ;;  %v231_v7 = vsel %vm230_vm0, %v222_v0, -inf  ;;  %v232_v8 = vsel %vm230_vm0, %v223_v1, -inf }
  0x3d   : > { %v233_v9 = vsel %vm230_vm0, %v224_v2, -inf  ;;  %v234_v10 = vsel %vm230_vm0, %v225_v3, -inf  ;;  %v235_v11 = vmax.f32 %v231_v7, %v232_v8  ;;  %v257_v12 = vmax.f32 %v226_v4, 1e-08  ;;  %v229_v17 = vld [vmem:[%s196_s18 + $0x6] sm:$0x3] }
  0x3e   : > { %v236_v13 = vmax.f32 %v233_v9, %v234_v10  ;;  %v258_v14 = vmax.f32 %v227_v5, 1e-08  ;;  %v259_v15 = vmax.f32 %v228_v6, 1e-08  ;;  %v260_v25 = vmax.f32 %v229_v17, 1e-08 }
  0x3f   : > { %v261_v16 = vmin.f32 %v257_v12, 1.0  ;;  %s422_s21 = sshll.u32 %s792_s25, 1  ;;  %s424_s29 = sshll.u32 %s648_s12, 5 }
  0x40   : > { %v237_v18 = vmax.f32 %v235_v11, %v236_v13  ;;  %v262_v19 = vmin.f32 %v258_v14, 1.0  ;;  %v263_v20 = vmin.f32 %v259_v15, 1.0  ;;  %v264_v30 = vmin.f32 %v260_v25, 1.0  ;;  %s221_s19 = scalar_lea.vmem [#allocation7], %s422_s21  ;;  %s301_s8 = scalar_lea.hbm %s860_s2, %s424_s29 }
  0x41   : > { %498 = vlog2.f32 %v261_v16  ;;  %s303_s28 = sshll.u32 %s221_s19, 4  ;;  %s289_s15 = scalar_lea.sflag [#allocation4], %s792_s25  ;;  %s304_s28 = int_to_ptr.vmem [resolvable:$true] %s303_s28 }
  0x42   : > { %v238_v21 = vsub.f32 %v222_v0, %v237_v18  ;;  %v239_v22 = vsub.f32 %v223_v1, %v237_v18  ;;  %v240_v23 = vsub.f32 %v224_v2, %v237_v18  ;;  %v241_v24 = vsub.f32 %v225_v3, %v237_v18  ;;  %s572_s16 = scalar_lea.vmem %s304_s28, 32  ;;  %s662_s30 = smov [#allocation7]  }
  0x43   : > { %500 = vlog2.f32 %v262_v19  ;;  %p573_p8 = scmp.ne.s32.totalorder %s304_s28, %s572_s16  ;;  %s576_s4 = sshll.u32 %s662_s30, 4  ;;  %s577_s4 = int_to_ptr.vmem [resolvable:$false] %s576_s4 }
  0x44   : > { %v242_v26 = vmul.f32 1.442695, %v238_v21  ;;  %v244_v27 = vmul.f32 1.442695, %v239_v22  ;;  %v246_v28 = vmul.f32 1.442695, %v240_v23  ;;  %502 = vlog2.f32 %v263_v20  ;;  %p579_p5 = scmp.lt.s32.totalorder %s304_s28, %s577_s4 }
  0x45   : > { %v248_v29 = vmul.f32 1.442695, %v241_v24  ;;  %p574_p0 = pnand %p573_p8, %p729_p9  ;;  %s578_s27 = scalar_lea.vmem %s577_s4, 64 }
  0x46   : > { %504 = vpow2.f32 %v242_v26  ;;  %p580_p6 = scmp.lt.s32.totalorder %s578_s27, %s572_s16 }
  0x47   : > { %506 = vpow2.f32 %v244_v27  ;;  %p575_p2 = pneg %p574_p0 }
  0x48   : > { %508 = vpow2.f32 %v246_v28  ;;  %p581_p4 = por %p580_p6, %p579_p5 }
  0x49   : > { %510 = vpow2.f32 %v248_v29 }
  0x4a   : > { %512 = vlog2.f32 %v264_v30  ;;  %p582_p7 = pnand %p581_p4, %p575_p2 }
  0x4e   : > { %v499_v31 = vpop.eup %498 }
  0x4f   : > { %v266_v35 = vmul.f32 0.6931472, %v499_v31 }
  0x50   : > { %v501_v32 = vpop.eup %500 }
  0x51   : > { %v503_v33 = vpop.eup %502  ;;  %v268_v36 = vmul.f32 0.6931472, %v501_v32 }
  0x52   : > { %v270_v45 = vmul.f32 0.6931472, %v503_v33 }
  0x53   : > { %v505_v34 = vpop.eup %504 }
  0x54   : > { %v507_v37 = vpop.eup %506  ;;  %v250_v38 = vsel %vm230_vm0, %v505_v34, 0.0  ;;  %v273_v46 = vmul.f32 %v505_v34, %v266_v35 }
  0x55   : > { %v509_v39 = vpop.eup %508  ;;  %v251_v40 = vsel %vm230_vm0, %v507_v37, 0.0  ;;  %v274_v47 = vmul.f32 %v507_v37, %v268_v36 }
  0x56   : > { %v511_v41 = vpop.eup %510  ;;  %v252_v42 = vadd.f32 %v251_v40, %v250_v38  ;;  %v253_v43 = vsel %vm230_vm0, %v509_v39, 0.0  ;;  %v275_v52 = vmul.f32 %v509_v39, %v270_v45  ;;  %v277_v53 = vsel %vm230_vm0, %v273_v46, 0.0 }
  0x57   : > { %v255_v44 = vsel %vm230_vm0, %v511_v41, 0.0  ;;  %v513_v48 = vpop.eup %512  ;;  %v278_v54 = vsel %vm230_vm0, %v274_v47, 0.0 }
  0x58   : > { %v254_v49 = vadd.f32 %v253_v43, %v252_v42  ;;  %v272_v51 = vmul.f32 0.6931472, %v513_v48  ;;  %v279_v55 = vadd.f32 %v278_v54, %v277_v53  ;;  %v280_v57 = vsel %vm230_vm0, %v275_v52, 0.0 }
  0x5a   : > { %v256_v50 = vadd.f32 %v255_v44, %v254_v49  ;;  %v276_v56 = vmul.f32 %v511_v41, %v272_v51  ;;  %v281_v58 = vadd.f32 %v280_v57, %v279_v55 }
  0x5c   : > { %514 = vrcp.f32 %v256_v50  ;;  %v282_v59 = vsel %vm230_vm0, %v276_v56, 0.0 }
  0x5d   : > { %v283_v60 = vadd.f32 %v282_v59, %v281_v58 }
  0x69   : > { %v515_v61 = vpop.eup %514 }
  0x6a   : > { %v285_v62 = vmul.f32 %v515_v61, %v283_v60 }
  0x6c   : > { %v286_v63 = vsub.f32 0.0, %v285_v62 }
  0x6e   : > { %287 = vst [vmem:[%s221_s19] sm:$0x3] %v286_v63 }
  0x6f   : > { %585 = shalt.err (!%p582_p7)
}
  0x70   : > { %s586_s12 = scalar_lea.hbm %s301_s8, 32  ;;  %s590_s6 = scalar_lea.hbm %s860_s2, 64 }
  0x71   : > { %p587_p10 = scmp.ne.s32.totalorder %s301_s8, %s586_s12  ;;  %p591_p3 = scmp.lt.s32.totalorder %s301_s8, %s860_s2 }
  0x72   : > { %p592_p8 = scmp.lt.s32.totalorder %s590_s6, %s586_s12 }
  0x73   : > { %p588_p1 = pnand %p587_p10, %p729_p9 }
  0x74   : > { %p593_p0 = por %p592_p8, %p591_p3 }
  0x75   : > { %p589_p13 = pneg %p588_p1 }
  0x77   : > { %p594_p12 = pnand %p593_p0, %p589_p13 }
  0x79   : > { %597 = shalt.err (!%p594_p12)
}
  0x7a   : > { %433 = dma.vmem_to_hbm [thread:$0]  (%p729_p9), %s304_s28, 32, %s301_s8, %s289_s15  }
  0x7b PF: > { %s315_s18 = sand.u32 1, %s636_s9   ;;  %p867_p2 = scmp.ge.s32.totalorder %s656_s14, 2 }
  0x7c   : > { %s316_s21 = scalar_lea.sflag [#allocation4], %s315_s18 }
  0x7d   : > { %p443_p5 = pnand %p867_p2, %p736_p11 }
  0x7f   : > { %p444_p6 = pneg %p443_p5 }
  0x81   : > { %631 = dma.done.wait (%p444_p6), %s316_s21, 32  }
  0x82   : > { %633 = vsyncadd (%p444_p6), %s316_s21, 4294967264  ;;  %s21_s14 = sadd.s32 1, %s656_s14   ;;  %s868_s9 = smov %s640_s10 }
  0x83   : > { %p18_p4 = scmp.ge.s32.totalorder %s21_s14, 4   ;;  %s869_s10 = smov %s644_s11 }
  0x84   : > { %s870_s11 = smov %s734_s23  ;;  %s871_s12 = smov %s652_s13 }
  0x85   : > { %s872_s13 = smov %s874_s17  ;;  %20 = sbr.rel (!%p18_p4) target bundleno = 8 (0x8), region = 86 }
  0x8a   :  { %321 = vsyncpa [#allocation3], 1 }
  0x8b   :  { %323 = vsyncpa [#allocation3 + $0x1], 1 }
  0x8c   :  { %324 = vsyncpa [#allocation6], 1 }
  0x8d   :  { %326 = vsyncpa [#allocation6 + $0x1], 1 }
  0x8e   :  { %327 = vsyncpa [#allocation4], 1 }
  0x8f   :  { %329 = vsyncpa [#allocation4 + $0x1], 1 }

</bundles_post_ra>
